<compile_context>
chip_gen: v6e
topology: v6e:2x2x1
jax: 0.10.0
libtpu: 0.0.40
codegen_flags: <defaults>
</compile_context>

<pallas_src>
import functools

import numpy as np
import jax
import jax.numpy as jnp
from jax.experimental import pallas as pl
from jax.experimental.pallas import tpu as pltpu


# ---------------------------------------------------------------------------
# Kernel
# ---------------------------------------------------------------------------
def _digits_kernel(x_ref, w1_ref, b1_ref, w2_ref, b2_ref, w4_ref, b4_ref, o_ref):
    """Fused forward for one batch tile.

    x_ref  : (TB, 64)       flattened 8x8 images
    w1_ref : (4, 64, 72)    conv1-as-matmul, one slab per 2x2 pool offset
    b1_ref : (1, 72)        conv1 bias broadcast over the pooled map
    w2_ref : (72, 4)        conv2 flattened to a dense layer (pre-transposed)
    b2_ref : (1, 4)
    w4_ref : (4, 10)        fc4 weight, pre-transposed
    b4_ref : (1, 10)
    o_ref  : (TB, 10)
    """
    x = x_ref[...]  # (TB, 64)

    # conv1 + relu + maxpool(2) + relu, fused as max of 4 shifted matmuls.
    m = jnp.dot(x, w1_ref[0], preferred_element_type=jnp.float32)
    for k in range(1, 4):
        m = jnp.maximum(m, jnp.dot(x, w1_ref[k], preferred_element_type=jnp.float32))
    h2 = jnp.maximum(m + b1_ref[...], 0.0)                       # (TB, 72)

    # conv2 (3x3 kernel on 3x3 map == dense 72 -> 4) + relu
    h3 = jnp.maximum(
        jnp.dot(h2, w2_ref[...], preferred_element_type=jnp.float32) + b2_ref[...],
        0.0,
    )                                                            # (TB, 4)

    # fc4: 4 -> 10
    o_ref[...] = (
        jnp.dot(h3, w4_ref[...], preferred_element_type=jnp.float32) + b4_ref[...]
    ).astype(o_ref.dtype)


# ---------------------------------------------------------------------------
# Wrapper
# ---------------------------------------------------------------------------
@jax.jit
def digits_convnet_forward(x, w1_pool, b1_pool, w2_t, b2_r, w4_t, b4_r):
    """x: (N, 8, 8) float32 -> (N, 10) float32."""
    N = x.shape[0]
    x2 = x.reshape(N, 64)                     # free row-major reshape, no HBM copy

    TB = N if N <= 128 else 128               # batch tile (full batch when small)
    grid = (pl.cdiv(N, TB),)

    flops = 2 * N * (4 * 64 * 72 + 72 * 4 + 4 * 10)
    bytes_accessed = 4 * (
        N * 64 + 4 * 64 * 72 + 72 + 72 * 4 + 4 + 4 * 10 + 10 + N * 10
    )

    return pl.pallas_call(
        _digits_kernel,
        out_shape=jax.ShapeDtypeStruct((N, 10), x.dtype),
        grid_spec=pltpu.PrefetchScalarGridSpec(
            num_scalar_prefetch=0,
            grid=grid,
            in_specs=[
                pl.BlockSpec((TB, 64), lambda i: (i, 0)),        # x tile
                pl.BlockSpec((4, 64, 72), lambda i: (0, 0, 0)),  # w1_pool (broadcast)
                pl.BlockSpec((1, 72), lambda i: (0, 0)),         # b1
                pl.BlockSpec((72, 4), lambda i: (0, 0)),         # w2^T
                pl.BlockSpec((1, 4), lambda i: (0, 0)),          # b2
                pl.BlockSpec((4, 10), lambda i: (0, 0)),         # w4^T
                pl.BlockSpec((1, 10), lambda i: (0, 0)),         # b4
            ],
            out_specs=pl.BlockSpec((TB, 10), lambda i: (i, 0)),
        ),
        compiler_params=pltpu.CompilerParams(
            dimension_semantics=("parallel",),                   # megacore on v7x
        ),
        cost_estimate=pl.CostEstimate(
            flops=flops, transcendentals=0, bytes_accessed=bytes_accessed
        ),
    )(x2, w1_pool, b1_pool, w2_t, b2_r, w4_t, b4_r)


# ---------------------------------------------------------------------------
# Parameter init (PyTorch-style U(-1/sqrt(fan_in), 1/sqrt(fan_in))) and
# one-time re-layout of the PyTorch parameters into kernel-friendly matrices.
# ---------------------------------------------------------------------------
def init_params(key):
    ks = jax.random.split(key, 6)

    def u(k, shape, fan_in):
        bound = 1.0 / np.sqrt(float(fan_in))
        return jax.random.uniform(k, shape, jnp.float32, -bound, bound)

    w1 = u(ks[0], (8, 1, 3, 3), 1 * 3 * 3)   # fc1 = Conv2d(1, 8, 3)
    b1 = u(ks[1], (8,), 1 * 3 * 3)
    w2 = u(ks[2], (4, 8, 3, 3), 8 * 3 * 3)   # fc3 = Conv2d(8, 4, 3)
    b2 = u(ks[3], (4,), 8 * 3 * 3)
    w4 = u(ks[4], (10, 4), 4)                # fc4 = Linear(4, 10)
    b4 = u(ks[5], (10,), 4)
    return w1, b1, w2, b2, w4, b4


def prepare_params(w1, b1, w2, b2, w4, b4):
    """Amortized, one-time re-layout of PyTorch-shaped params."""
    w1_np = np.asarray(w1)                               # (8, 1, 3, 3)
    # w1_pool[k, row, c*9 + py*3 + px] = w1[c, 0, ky, kx]
    #   with row = (2*py + dy + ky) * 8 + (2*px + dx + kx), k = (dy, dx)
    w1_pool = np.zeros((4, 64, 72), np.float32)
    for k, (dy, dx) in enumerate([(0, 0), (0, 1), (1, 0), (1, 1)]):
        for c in range(8):
            for py in range(3):
                for px in range(3):
                    g = c * 9 + py * 3 + px
                    oy, ox = 2 * py + dy, 2 * px + dx
                    for ky in range(3):
                        for kx in range(3):
                            row = (oy + ky) * 8 + (ox + kx)
                            w1_pool[k, row, g] = w1_np[c, 0, ky, kx]

    b1_pool = jnp.asarray(np.repeat(np.asarray(b1), 9).reshape(1, 72))
    w2_t = jnp.asarray(w2).reshape(4, 72).T              # (72, 4)
    b2_r = jnp.asarray(b2).reshape(1, 4)
    w4_t = jnp.asarray(w4).T                             # (4, 10)
    b4_r = jnp.asarray(b4).reshape(1, 10)
    return jnp.asarray(w1_pool), b1_pool, w2_t, b2_r, w4_t, b4_r


# ---------------------------------------------------------------------------
# Pure-JAX reference of the exact PyTorch forward (for correctness check).
# ---------------------------------------------------------------------------
def reference_forward(x, w1, b1, w2, b2, w4, b4):
    N = x.shape[0]
    xb = x.reshape(N, 1, 8, 8)
    dn = ("NCHW", "OIHW", "NCHW")
    y = jax.lax.conv_general_dilated(xb, w1, (1, 1), "VALID", dimension_numbers=dn)
    y = jax.nn.relu(y + b1.reshape(1, 8, 1, 1))
    y = jax.lax.reduce_window(
        y, -jnp.inf, jax.lax.max, (1, 1, 2, 2), (1, 1, 2, 2), "VALID"
    )
    y = jax.nn.relu(y)
    y = jax.lax.conv_general_dilated(y, w2, (1, 1), "VALID", dimension_numbers=dn)
    y = jax.nn.relu(y + b2.reshape(1, 4, 1, 1))
    y = y.reshape(N, 4)
    return y @ w4.T + b4


if __name__ == "__main__":
    key = jax.random.PRNGKey(0)
    k_x, k_p = jax.random.split(key)

    batch = 2
    x = jax.random.normal(k_x, (batch, 8, 8), jnp.float32)

    raw_params = init_params(k_p)
    kernel_params = prepare_params(*raw_params)

    out = digits_convnet_forward(x, *kernel_params)
    out = jax.block_until_ready(out)

    ref = reference_forward(x, *raw_params)
    assert out.shape == (batch, 10)
    assert jnp.allclose(out, ref, atol=1e-3, rtol=1e-3), (out, ref)

    print("KERNEL_OK")
</pallas_src>

<mosaic_0001>
module attributes {stable_mosaic.version = 11 : i64} {
  func.func @_digits_kernel(%arg0: i32, %arg1: memref<2x64xf32, #tpu.memory_space<vmem>>, %arg2: memref<4x64x72xf32, #tpu.memory_space<vmem>>, %arg3: memref<1x72xf32, #tpu.memory_space<vmem>>, %arg4: memref<72x4xf32, #tpu.memory_space<vmem>>, %arg5: memref<1x4xf32, #tpu.memory_space<vmem>>, %arg6: memref<4x10xf32, #tpu.memory_space<vmem>>, %arg7: memref<1x10xf32, #tpu.memory_space<vmem>>, %arg8: memref<2x10xf32, #tpu.memory_space<vmem>>) attributes {dimension_semantics = [#tpu.dimension_semantics<parallel>], iteration_bounds = array<i64: 1>, scalar_prefetch = 0 : i64, scratch_operands = 0 : i64, tpu.core_type = #tpu.core_type<tc>, window_params = [{transform_indices = @transform_0, window_bounds = array<i64: 2, 64>}, {pipeline_mode = #tpu.pipeline_mode<synchronous>, transform_indices = @transform_1, window_bounds = array<i64: 4, 64, 72>}, {pipeline_mode = #tpu.pipeline_mode<synchronous>, transform_indices = @transform_2, window_bounds = array<i64: 1, 72>}, {pipeline_mode = #tpu.pipeline_mode<synchronous>, transform_indices = @transform_3, window_bounds = array<i64: 72, 4>}, {pipeline_mode = #tpu.pipeline_mode<synchronous>, transform_indices = @transform_4, window_bounds = array<i64: 1, 4>}, {pipeline_mode = #tpu.pipeline_mode<synchronous>, transform_indices = @transform_5, window_bounds = array<i64: 4, 10>}, {pipeline_mode = #tpu.pipeline_mode<synchronous>, transform_indices = @transform_6, window_bounds = array<i64: 1, 10>}, {transform_indices = @transform_7, window_bounds = array<i64: 2, 10>}]} {
    %c0 = arith.constant 0 : index
    %c0_0 = arith.constant 0 : index
    %0 = vector.load %arg1[%c0, %c0_0] : memref<2x64xf32, #tpu.memory_space<vmem>>, vector<2x64xf32>
    %c0_1 = arith.constant 0 : index
    %c0_2 = arith.constant 0 : index
    %c0_3 = arith.constant 0 : index
    %1 = vector.load %arg2[%c0_1, %c0_2, %c0_3] : memref<4x64x72xf32, #tpu.memory_space<vmem>>, vector<1x64x72xf32>
    %2 = vector.shape_cast %1 : vector<1x64x72xf32> to vector<64x72xf32>
    %cst = arith.constant dense<0.000000e+00> : vector<2x72xf32>
    %3 = tpu.matmul %0, %2, %cst {dimension_numbers = #tpu.dot_dimension_numbers<[1], [0], [0], [1], [0, 0, 1, 1], [], []>} : vector<2x64xf32>, vector<64x72xf32>, vector<2x72xf32> -> vector<2x72xf32>
    %c1 = arith.constant 1 : index
    %c0_4 = arith.constant 0 : index
    %c0_5 = arith.constant 0 : index
    %4 = vector.load %arg2[%c1, %c0_4, %c0_5] : memref<4x64x72xf32, #tpu.memory_space<vmem>>, vector<1x64x72xf32>
    %5 = vector.shape_cast %4 : vector<1x64x72xf32> to vector<64x72xf32>
    %cst_6 = arith.constant dense<0.000000e+00> : vector<2x72xf32>
    %6 = tpu.matmul %0, %5, %cst_6 {dimension_numbers = #tpu.dot_dimension_numbers<[1], [0], [0], [1], [0, 0, 1, 1], [], []>} : vector<2x64xf32>, vector<64x72xf32>, vector<2x72xf32> -> vector<2x72xf32>
    %7 = arith.maximumf %3, %6 : vector<2x72xf32>
    %c2 = arith.constant 2 : index
    %c0_7 = arith.constant 0 : index
    %c0_8 = arith.constant 0 : index
    %8 = vector.load %arg2[%c2, %c0_7, %c0_8] : memref<4x64x72xf32, #tpu.memory_space<vmem>>, vector<1x64x72xf32>
    %9 = vector.shape_cast %8 : vector<1x64x72xf32> to vector<64x72xf32>
    %cst_9 = arith.constant dense<0.000000e+00> : vector<2x72xf32>
    %10 = tpu.matmul %0, %9, %cst_9 {dimension_numbers = #tpu.dot_dimension_numbers<[1], [0], [0], [1], [0, 0, 1, 1], [], []>} : vector<2x64xf32>, vector<64x72xf32>, vector<2x72xf32> -> vector<2x72xf32>
    %11 = arith.maximumf %7, %10 : vector<2x72xf32>
    %c3 = arith.constant 3 : index
    %c0_10 = arith.constant 0 : index
    %c0_11 = arith.constant 0 : index
    %12 = vector.load %arg2[%c3, %c0_10, %c0_11] : memref<4x64x72xf32, #tpu.memory_space<vmem>>, vector<1x64x72xf32>
    %13 = vector.shape_cast %12 : vector<1x64x72xf32> to vector<64x72xf32>
    %cst_12 = arith.constant dense<0.000000e+00> : vector<2x72xf32>
    %14 = tpu.matmul %0, %13, %cst_12 {dimension_numbers = #tpu.dot_dimension_numbers<[1], [0], [0], [1], [0, 0, 1, 1], [], []>} : vector<2x64xf32>, vector<64x72xf32>, vector<2x72xf32> -> vector<2x72xf32>
    %15 = arith.maximumf %11, %14 : vector<2x72xf32>
    %c0_13 = arith.constant 0 : index
    %c0_14 = arith.constant 0 : index
    %16 = vector.load %arg3[%c0_13, %c0_14] : memref<1x72xf32, #tpu.memory_space<vmem>>, vector<1x72xf32>
    %17 = vector.broadcast %16 : vector<1x72xf32> to vector<2x72xf32>
    %18 = arith.addf %15, %17 : vector<2x72xf32>
    %cst_15 = arith.constant 0.000000e+00 : f32
    %19 = vector.broadcast %cst_15 : f32 to vector<2x72xf32>
    %20 = arith.maximumf %18, %19 : vector<2x72xf32>
    %c0_16 = arith.constant 0 : index
    %c0_17 = arith.constant 0 : index
    %21 = vector.load %arg4[%c0_16, %c0_17] : memref<72x4xf32, #tpu.memory_space<vmem>>, vector<72x4xf32>
    %cst_18 = arith.constant dense<0.000000e+00> : vector<2x4xf32>
    %22 = tpu.matmul %20, %21, %cst_18 {dimension_numbers = #tpu.dot_dimension_numbers<[1], [0], [0], [1], [0, 0, 1, 1], [], []>} : vector<2x72xf32>, vector<72x4xf32>, vector<2x4xf32> -> vector<2x4xf32>
    %c0_19 = arith.constant 0 : index
    %c0_20 = arith.constant 0 : index
    %23 = vector.load %arg5[%c0_19, %c0_20] : memref<1x4xf32, #tpu.memory_space<vmem>>, vector<1x4xf32>
    %24 = vector.broadcast %23 : vector<1x4xf32> to vector<2x4xf32>
    %25 = arith.addf %22, %24 : vector<2x4xf32>
    %cst_21 = arith.constant 0.000000e+00 : f32
    %26 = vector.broadcast %cst_21 : f32 to vector<2x4xf32>
    %27 = arith.maximumf %25, %26 : vector<2x4xf32>
    %c0_22 = arith.constant 0 : index
    %c0_23 = arith.constant 0 : index
    %28 = vector.load %arg6[%c0_22, %c0_23] : memref<4x10xf32, #tpu.memory_space<vmem>>, vector<4x10xf32>
    %cst_24 = arith.constant dense<0.000000e+00> : vector<2x10xf32>
    %29 = tpu.matmul %27, %28, %cst_24 {dimension_numbers = #tpu.dot_dimension_numbers<[1], [0], [0], [1], [0, 0, 1, 1], [], []>} : vector<2x4xf32>, vector<4x10xf32>, vector<2x10xf32> -> vector<2x10xf32>
    %c0_25 = arith.constant 0 : index
    %c0_26 = arith.constant 0 : index
    %30 = vector.load %arg7[%c0_25, %c0_26] : memref<1x10xf32, #tpu.memory_space<vmem>>, vector<1x10xf32>
    %31 = vector.broadcast %30 : vector<1x10xf32> to vector<2x10xf32>
    %32 = arith.addf %29, %31 : vector<2x10xf32>
    %c0_27 = arith.constant 0 : index
    %c0_28 = arith.constant 0 : index
    %33 = vector.load %arg8[%c0_27, %c0_28] : memref<2x10xf32, #tpu.memory_space<vmem>>, vector<2x10xf32>
    tpu.vector_store %arg8[%c0_27, %c0_28], %32 {strides = array<i32>} : memref<2x10xf32, #tpu.memory_space<vmem>>, vector<2x10xf32>,
    return
  }
  func.func @transform_0(%arg0: i32) -> (i32, i32) {
    %c0_i32 = arith.constant 0 : i32
    %c0_i32_0 = arith.constant 0 : i32
    return %arg0, %c0_i32 : i32, i32
  }
  func.func @transform_1(%arg0: i32) -> (i32, i32, i32) {
    %c0_i32 = arith.constant 0 : i32
    %c0_i32_0 = arith.constant 0 : i32
    %c0_i32_1 = arith.constant 0 : i32
    %c0_i32_2 = arith.constant 0 : i32
    return %c0_i32, %c0_i32_0, %c0_i32_1 : i32, i32, i32
  }
  func.func @transform_2(%arg0: i32) -> (i32, i32) {
    %c0_i32 = arith.constant 0 : i32
    %c0_i32_0 = arith.constant 0 : i32
    %c0_i32_1 = arith.constant 0 : i32
    return %c0_i32, %c0_i32_0 : i32, i32
  }
  func.func @transform_3(%arg0: i32) -> (i32, i32) {
    %c0_i32 = arith.constant 0 : i32
    %c0_i32_0 = arith.constant 0 : i32
    %c0_i32_1 = arith.constant 0 : i32
    return %c0_i32, %c0_i32_0 : i32, i32
  }
  func.func @transform_4(%arg0: i32) -> (i32, i32) {
    %c0_i32 = arith.constant 0 : i32
    %c0_i32_0 = arith.constant 0 : i32
    %c0_i32_1 = arith.constant 0 : i32
    return %c0_i32, %c0_i32_0 : i32, i32
  }
  func.func @transform_5(%arg0: i32) -> (i32, i32) {
    %c0_i32 = arith.constant 0 : i32
    %c0_i32_0 = arith.constant 0 : i32
    %c0_i32_1 = arith.constant 0 : i32
    return %c0_i32, %c0_i32_0 : i32, i32
  }
  func.func @transform_6(%arg0: i32) -> (i32, i32) {
    %c0_i32 = arith.constant 0 : i32
    %c0_i32_0 = arith.constant 0 : i32
    %c0_i32_1 = arith.constant 0 : i32
    return %c0_i32, %c0_i32_0 : i32, i32
  }
  func.func @transform_7(%arg0: i32) -> (i32, i32) {
    %c0_i32 = arith.constant 0 : i32
    %c0_i32_0 = arith.constant 0 : i32
    return %arg0, %c0_i32 : i32, i32
  }
}

</mosaic_0001>

<bundles_post_ra>
// kernel: digits_convnet_forward.1
= control target key start
LH: loop header
LB: loop body
LE: loop exit
PB: predicated region body
PF: predicated region fallthrough
CT: control target
= control target key end

     0   :  { %12 = vsyncpa [#allocation3], 0  ;;  %s929_s0 = inlined_call_operand.vmem [shape: f32[2,64], index: 0, kind: input, shape index: {}]   ;;  %s930_s1 = inlined_call_operand.hbm [shape: f32[4,64,72], index: 1, kind: input, shape index: {}]   ;;  %s931_s2 = inlined_call_operand.vmem [shape: f32[1,72], index: 2, kind: input, shape index: {}]   ;;  %s932_s3 = inlined_call_operand.vmem [shape: f32[72,4], index: 3, kind: input, shape index: {}]   ;;  %s933_s4 = inlined_call_operand.vmem [shape: f32[1,4], index: 4, kind: input, shape index: {}]   ;;  %s934_s5 = inlined_call_operand.vmem [shape: f32[4,10], index: 5, kind: input, shape index: {}]   ;;  %s935_s6 = inlined_call_operand.vmem [shape: f32[1,10], index: 6, kind: input, shape index: {}]   ;;  %s936_s7 = inlined_call_operand.hbm [shape: f32[2,10], index: 7, kind: output, shape index: {}]  }
   0x1   :  { %13 = vsyncpa [#allocation4], 0  ;;  %s777_s24 = smov [#allocation2]  }
   0x2   :  { %s21_s25 = sshll.u32 %s777_s24, 4  ;;  %s22_s25 = int_to_ptr.vmem [resolvable:$true] %s21_s25 }
   0x3   :  { %s741_s26 = scalar_lea.vmem %s22_s25, 4096  ;;  %p746_p1 = scmp.lt.s32.totalorder %s22_s25, %s22_s25 }
   0x4   :  { %p742_p0 = scmp.ne.s32.totalorder %s22_s25, %s741_s26  ;;  %p747_p2 = scmp.lt.s32.totalorder %s741_s26, %s741_s26 }
   0x6   :  { %p748_p3 = por %p747_p2, %p746_p1 }
   0x8   :  { %p749_p4 = pnand %p748_p3, %p742_p0 }
   0xa   :  { %752 = shalt.err (!%p749_p4)
}
   0xb   :  { %s778_s27 = smov 128   ;;  %s779_s28 = smov 8  }
   0xc   :  { %27 = dma.hbm_to_vmem [thread:$0]  %s930_s1, 4096, %s22_s25, [#allocation3], %s778_s27, %s778_s27, %s779_s28  }
   0xd   :  { %773 = dma.done.wait [#allocation3], 4096  }
   0xe   :  { %774 = vsyncadd [#allocation3], 4294963200  ;;  %v780_v0 = vmov 0.0   ;;  %vm781_vm0 = vmmov 0   ;;  %v49_v1 = vld [vmem:[#allocation2 + $0x38] sm:$0xff]  ;;  %v48_v3 = vld [vmem:[#allocation2 + $0x30] sm:$0xff] }
   0xf   :  { %625 = vmatprep.subr.mxu0 %v780_v0  ;;  %644 = vmatprep.subr.mxu1 %v780_v0  ;;  %v132_v2 = vld [vmem:[#allocation2 + $0x78] sm:$0xff]  ;;  %v131_v4 = vld [vmem:[#allocation2 + $0x70] sm:$0xff]  ;;  %v47_v5 = vld [vmem:[#allocation2 + $0x28] sm:$0xff]  ;;  %vm50_vm1 = vcmask 523264   ;;  %vm389_vm2 = vcmask 588800   ;;  %vm476_vm3 = vcmask 1043456  }
  0x10   :  { %641 = vmatprep.mubr.msk.f32.mxu0 %vm781_vm0, %v780_v0  ;;  %660 = vmatprep.mubr.msk.f32.mxu1 %vm781_vm0, %v780_v0  ;;  %v130_v6 = vld [vmem:[#allocation2 + $0x68] sm:$0xff]  ;;  %v46_v7 = vld [vmem:[#allocation2 + $0x20] sm:$0xff]  ;;  %v45_v9 = vld [vmem:[#allocation2 + $0x18] sm:$0xff]  ;;  %vm472_vm4 = vcmask 31744   ;;  %s782_s8 = smov [#allocation5]   ;;  %vm550_vm5 = vcmask 74752  }
  0x11   :  { %626 = vmatpush3.msra.mxu0 %v49_v1  ;;  %645 = vmatpush3.msra.mxu1 %v132_v2  ;;  %v129_v8 = vld [vmem:[#allocation2 + $0x60] sm:$0xff]  ;;  %v128_v10 = vld [vmem:[#allocation2 + $0x58] sm:$0xff]  ;;  %v44_v11 = vld [vmem:[#allocation2 + $0x10] sm:$0xff] }
  0x12   :  { %627 = vmatprep.subr.mxu0 %v780_v0  ;;  %646 = vmatprep.subr.mxu1 %v780_v0  ;;  %v127_v12 = vld [vmem:[#allocation2 + $0x50] sm:$0xff]  ;;  %v43_v13 = vld [vmem:[#allocation2 + $0x8] sm:$0xff]  ;;  %v42_v15 = vld [vmem:[#allocation2] sm:$0xff] }
  0x13   :  { %628 = vmatpush3.msra.mxu0 %v48_v3  ;;  %647 = vmatpush3.msra.mxu1 %v131_v4  ;;  %v126_v14 = vld [vmem:[#allocation2 + $0x48] sm:$0xff]  ;;  %v125_v16 = vld [vmem:[#allocation2 + $0x40] sm:$0xff]  ;;  %v212_v18 = vld [vmem:[#allocation2 + $0xb8] sm:$0xff] }
  0x14   :  { %629 = vmatprep.subr.mxu0 %v780_v0  ;;  %648 = vmatprep.subr.mxu1 %v780_v0  ;;  %v41_v17 = vld [vmem:[%s929_s0] sm:$0x3]  ;;  %v292_v19 = vld [vmem:[#allocation2 + $0xf8] sm:$0xff]  ;;  %v211_v20 = vld [vmem:[#allocation2 + $0xb0] sm:$0xff]  ;;  %s558_s0 = sshll.u32 %s782_s8, 4  ;;  %s559_s0 = int_to_ptr.vmem [resolvable:$true] %s558_s0 }
  0x15   :  { %630 = vmatpush3.msra.mxu0 %v47_v5  ;;  %649 = vmatpush3.msra.mxu1 %v130_v6  ;;  %v291_v21 = vld [vmem:[#allocation2 + $0xf0] sm:$0xff]  ;;  %v210_v22 = vld [vmem:[#allocation2 + $0xa8] sm:$0xff]  ;;  %v209_v24 = vld [vmem:[#allocation2 + $0xa0] sm:$0xff]  ;;  %p758_p6 = scmp.lt.s32.totalorder %s559_s0, %s559_s0 }
  0x16   :  { %631 = vmatprep.subr.mxu0 %v780_v0  ;;  %650 = vmatprep.subr.mxu1 %v780_v0  ;;  %v290_v23 = vld [vmem:[#allocation2 + $0xe8] sm:$0xff]  ;;  %v289_v25 = vld [vmem:[#allocation2 + $0xe0] sm:$0xff]  ;;  %v208_v26 = vld [vmem:[#allocation2 + $0x98] sm:$0xff] }
  0x17   :  { %632 = vmatpush3.msra.mxu0 %v46_v7  ;;  %651 = vmatpush3.msra.mxu1 %v129_v8  ;;  %v288_v27 = vld [vmem:[#allocation2 + $0xd8] sm:$0xff]  ;;  %v207_v28 = vld [vmem:[#allocation2 + $0x90] sm:$0xff]  ;;  %v206_v30 = vld [vmem:[#allocation2 + $0x88] sm:$0xff] }
  0x18   :  { %633 = vmatprep.subr.mxu0 %v780_v0  ;;  %652 = vmatprep.subr.mxu1 %v780_v0  ;;  %v287_v29 = vld [vmem:[#allocation2 + $0xd0] sm:$0xff]  ;;  %v286_v31 = vld [vmem:[#allocation2 + $0xc8] sm:$0xff]  ;;  %v205_v32 = vld [vmem:[#allocation2 + $0x80] sm:$0xff] }
  0x19   :  { %634 = vmatpush3.msra.mxu0 %v45_v9  ;;  %653 = vmatpush3.msra.mxu1 %v128_v10  ;;  %v285_v33 = vld [vmem:[#allocation2 + $0xc0] sm:$0xff]  ;;  %v380_v35 = vld [vmem:[%s932_s3 + $0x38] sm:$0xff]  ;;  %v379_v36 = vld [vmem:[%s932_s3 + $0x30] sm:$0xff] }
  0x1a   :  { %635 = vmatprep.subr.mxu0 %v780_v0  ;;  %654 = vmatprep.subr.mxu1 %v780_v0  ;;  %v381_v34 = vld [vmem:[%s932_s3 + $0x40] sm:$0xff]  ;;  %v378_v37 = vld [vmem:[%s932_s3 + $0x28] sm:$0xff]  ;;  %v376_v39 = vld [vmem:[%s932_s3 + $0x18] sm:$0xff] }
  0x1b   :  { %636 = vmatpush3.msra.mxu0 %v44_v11  ;;  %655 = vmatpush3.msra.mxu1 %v127_v12  ;;  %v377_v38 = vld [vmem:[%s932_s3 + $0x20] sm:$0xff]  ;;  %v375_v40 = vld [vmem:[%s932_s3 + $0x10] sm:$0xff]  ;;  %v374_v41 = vld [vmem:[%s932_s3 + $0x8] sm:$0xff] }
  0x1c   :  { %637 = vmatprep.subr.mxu0 %v780_v0  ;;  %656 = vmatprep.subr.mxu1 %v780_v0  ;;  %v373_v42 = vld [vmem:[%s932_s3] sm:$0xff] }
  0x1d   :  { %638 = vmatpush3.msra.mxu0 %v43_v13  ;;  %657 = vmatpush3.msra.mxu1 %v126_v14  ;;  %v571_v51 = vld [vmem:[%s931_s2] ss:$0 sm:$0xff] }
  0x1e   :  { %639 = vmatprep.subr.mxu0 %v780_v0  ;;  %658 = vmatprep.subr.mxu1 %v780_v0  ;;  %v464_v57 = vld [vmem:[%s934_s5] sm:$0xf]  ;;  %s753_s5 = scalar_lea.vmem %s559_s0, 32 }
  0x1f   :  { %640 = vmatpush3.msra.mxu0 %v42_v15  ;;  %659 = vmatpush3.msra.mxu1 %v125_v16  ;;  %v572_v58 = vld [vmem:[%s933_s4] ss:$0 sm:$0xff]  ;;  %p754_p5 = scmp.ne.s32.totalorder %s559_s0, %s753_s5  ;;  %p759_p7 = scmp.lt.s32.totalorder %s753_s5, %s753_s5 }
  0x20   :  { %642 = vmatmul.mubr.msk.f32.vlgmr.msra.gmra.mxu0 %vm50_vm1, %v41_v17  ;;  %663 = vmatprep.subr.mxu0 %v780_v0  ;;  %v574_v63 = vld [vmem:[%s935_s6] ss:$0 sm:$0xff] }
  0x21   :  { %682 = vmatprep.subr.mxu1 %v780_v0  ;;  %661 = vmatmul.mubr.msk.f32.vlgmr.msra.gmra.mxu1 %vm50_vm1, %v41_v17  ;;  %p760_p8 = por %p759_p7, %p758_p6 }
  0x22   :  { %664 = vmatpush3.msra.mxu0 %v212_v18  ;;  %683 = vmatpush3.msra.mxu1 %v292_v19 }
  0x23   :  { %665 = vmatprep.subr.mxu0 %v780_v0  ;;  %684 = vmatprep.subr.mxu1 %v780_v0  ;;  %p761_p9 = pnand %p760_p8, %p754_p5 }
  0x24   :  { %666 = vmatpush3.msra.mxu0 %v211_v20  ;;  %685 = vmatpush3.msra.mxu1 %v291_v21 }
  0x25   :  { %667 = vmatprep.subr.mxu0 %v780_v0  ;;  %686 = vmatprep.subr.mxu1 %v780_v0 }
  0x26   :  { %668 = vmatpush3.msra.mxu0 %v210_v22  ;;  %687 = vmatpush3.msra.mxu1 %v290_v23 }
  0x27   :  { %669 = vmatprep.subr.mxu0 %v780_v0  ;;  %688 = vmatprep.subr.mxu1 %v780_v0 }
  0x28   :  { %670 = vmatpush3.msra.mxu0 %v209_v24  ;;  %689 = vmatpush3.msra.mxu1 %v289_v25 }
  0x29   :  { %671 = vmatprep.subr.mxu0 %v780_v0  ;;  %690 = vmatprep.subr.mxu1 %v780_v0 }
  0x2a   :  { %672 = vmatpush3.msra.mxu0 %v208_v26  ;;  %691 = vmatpush3.msra.mxu1 %v288_v27 }
  0x2b   :  { %673 = vmatprep.subr.mxu0 %v780_v0  ;;  %692 = vmatprep.subr.mxu1 %v780_v0 }
  0x2c   :  { %674 = vmatpush3.msra.mxu0 %v207_v28  ;;  %693 = vmatpush3.msra.mxu1 %v287_v29 }
  0x2d   :  { %675 = vmatprep.subr.mxu0 %v780_v0  ;;  %694 = vmatprep.subr.mxu1 %v780_v0 }
  0x2e   :  { %676 = vmatpush3.msra.mxu0 %v206_v30  ;;  %695 = vmatpush3.msra.mxu1 %v286_v31 }
  0x2f   :  { %677 = vmatprep.subr.mxu0 %v780_v0  ;;  %696 = vmatprep.subr.mxu1 %v780_v0 }
  0x30   :  { %678 = vmatpush3.msra.mxu0 %v205_v32  ;;  %679 = vmatprep.mubr.msk.f32.mxu0 %vm781_vm0, %v780_v0 }
  0x31   :  { %697 = vmatpush3.msra.mxu1 %v285_v33  ;;  %698 = vmatprep.mubr.msk.f32.mxu1 %vm781_vm0, %v780_v0 }
  0x32   :  { %680 = vmatmul.mubr.msk.f32.vlgmr.msra.gmra.mxu0 %vm50_vm1, %v41_v17  ;;  %699 = vmatmul.mubr.msk.f32.vlgmr.msra.gmra.mxu1 %vm50_vm1, %v41_v17 }
  0x33   :  { %701 = vmatprep.subr.mxu0 %v780_v0  ;;  %719 = vmatprep.mubr.msk.f32.mxu0 %vm781_vm0, %v780_v0 }
  0x34   :  { %722 = vmatprep.subr.mxu1 %v780_v0  ;;  %724 = vmatprep.mubr.msk.f32.mxu1 %vm781_vm0, %v780_v0 }
  0x35   :  { %702 = vmatpush3.msra.mxu0 %v381_v34  ;;  %723 = vmatpush3.msk.msra.mxu1 %vm476_vm3, %v464_v57 }
  0x36   :  { %703 = vmatprep.subr.mxu0 %v780_v0 }
  0x37   :  { %704 = vmatpush3.msra.mxu0 %v380_v35 }
  0x38   :  { %705 = vmatprep.subr.mxu0 %v780_v0 }
  0x39   :  { %706 = vmatpush3.msra.mxu0 %v379_v36 }
  0x3a   :  { %707 = vmatprep.subr.mxu0 %v780_v0 }
  0x3b   :  { %708 = vmatpush3.msra.mxu0 %v378_v37 }
  0x3c   :  { %709 = vmatprep.subr.mxu0 %v780_v0 }
  0x3d   :  { %710 = vmatpush3.msra.mxu0 %v377_v38 }
  0x3e   :  { %711 = vmatprep.subr.mxu0 %v780_v0 }
  0x3f   :  { %712 = vmatpush3.msra.mxu0 %v376_v39 }
  0x40   :  { %713 = vmatprep.subr.mxu0 %v780_v0 }
  0x41   :  { %714 = vmatpush3.msra.mxu0 %v375_v40 }
  0x42   :  { %715 = vmatprep.subr.mxu0 %v780_v0 }
  0x43   :  { %716 = vmatpush3.msra.mxu0 %v374_v41 }
  0x44   :  { %717 = vmatprep.subr.mxu0 %v780_v0 }
  0x45   :  { %718 = vmatpush3.msra.mxu0 %v373_v42 }
  0xe0   :  { %v120_v43 = vpop.f32.mrf.mxu0 }
  0xe1   :  { %v199_v44 = vpop.f32.mrf.mxu1 }
  0xe2   :  { %v643_v45 = vpop.f32.mrf.mxu0  ;;  %v203_v47 = vmax.f32 %v120_v43, %v199_v44 }
  0xe3   :  { %v662_v46 = vpop.f32.mrf.mxu1 }
  0xf2   :  { %v279_v48 = vpop.f32.mrf.mxu0  ;;  %v359_v49 = vpop.f32.mrf.mxu1 }
  0xf3   :  { %v283_v50 = vmax.f32 %v203_v47, %v279_v48 }
  0xf4   :  { %v681_v52 = vpop.f32.mrf.mxu0  ;;  %v700_v53 = vpop.f32.mrf.mxu1 }
  0xf5   :  { %v363_v54 = vmax.f32 %v283_v50, %v359_v49 }
  0xf7   :  { %v371_v55 = vadd.f32 %v571_v51, %v363_v54 }
  0xf9   :  { %v372_v56 = vmax.f32 %v371_v55, 0.0 }
  0xfb   :  { %720 = vmatmul.mubr.msk.f32.vlgmr.msra.gmra.mxu0 %vm389_vm2, %v372_v56 }
 0x1bb   :  { %v459_v59 = vpop.f32.mrf.mxu0 }
 0x1bc   :  { %v460_v60 = vadd.f32 %v572_v58, %v459_v59 }
 0x1bd   :  { %v721_v61 = vpop.f32.mrf.mxu0 }
 0x1be   :  { %v463_v62 = vmax.f32 %v460_v60, 0.0 }
 0x1c0   :  { %725 = vmatmul.mubr.msk.f32.vlgmr.msra.gmra.mxu1 %vm472_vm4, %v463_v62 }
 0x280   :  { %v546_v0 = vpop.f32.mrf.mxu1 }
 0x281   :  { %v547_v1 = vadd.f32 %v574_v63, %v546_v0 }
 0x282   :  { %v726_v2 = vpop.f32.mrf.mxu1 }
 0x283   :  { %551 = vst.msk [vmem:[#allocation5] sm:$0x3] %vm550_vm5, %v547_v1 }
 0x284   :  { %764 = shalt.err (!%p761_p9)
}
 0x285   :  { %561 = dma.vmem_to_hbm [thread:$0]  %s559_s0, 32, %s936_s7, [#allocation4]  }
 0x286   :  { %775 = dma.done.wait [#allocation4], 32  }
 0x287   :  { %776 = vsyncadd [#allocation4], 4294967264 }
 0x288   :  { %565 = vsyncpa [#allocation3], 1 }
 0x289   :  { %566 = vsyncpa [#allocation4], 1 }

</bundles_post_ra>
